<compile_context>
chip_gen: v5e
topology: v5e:2x2
jax: 0.10.0
libtpu: 0.0.40
codegen_flags: <defaults>
</compile_context>

<pallas_src>
import functools

import jax
import jax.numpy as jnp
from jax.experimental import pallas as pl
from jax.experimental.pallas import tpu as pltpu


def _round_up(n, m):
    return ((n + m - 1) // m) * m


def _mlp_logsoftmax_kernel(x_ref, w0_ref, b0_ref, w1_ref, b1_ref, w2_ref, b2_ref,
                           o_ref):
    # Activations stay f32; cast only at the MXU inputs (matches weight dtype).
    x = x_ref[...]

    # Layer 0: Linear(dim_input -> hidden_pad) + ReLU   (f32 accumulate)
    h = jnp.dot(x.astype(w0_ref.dtype), w0_ref[...],
                preferred_element_type=jnp.float32)
    h = jnp.maximum(h + b0_ref[...], 0.0)

    # Layer 1: Linear(hidden_pad -> hidden_pad) + ReLU
    h = jnp.dot(h.astype(w1_ref.dtype), w1_ref[...],
                preferred_element_type=jnp.float32)
    h = jnp.maximum(h + b1_ref[...], 0.0)

    # Layer 2: Linear(hidden_pad -> dout_pad).  Padded logit columns are masked
    # for free: their weights are zero and their bias entries are -1e30.
    logits = jnp.dot(h.astype(w2_ref.dtype), w2_ref[...],
                     preferred_element_type=jnp.float32)
    logits = logits + b2_ref[...]

    # log_softmax over the feature axis (dim=1), numerically stable.
    m = jnp.max(logits, axis=1, keepdims=True)
    shifted = logits - m
    lse = jnp.log(jnp.sum(jnp.exp(shifted), axis=1, keepdims=True))
    o_ref[...] = (shifted - lse).astype(o_ref.dtype)


@functools.partial(jax.jit,
                   static_argnames=("block_b", "compute_dtype", "out_dtype",
                                    "min_grid_steps"))
def dnn_classifier_forward(x, w0, b0, w1, b1, w2, b2,
                           *, block_b=1024, compute_dtype=jnp.bfloat16,
                           out_dtype=jnp.float32, min_grid_steps=2):
    B, dim_input = x.shape
    hidden = w0.shape[1]
    dim_output = w2.shape[1]

    # Lane-dense hidden and output widths (multiples of 128).
    hid_pad = _round_up(hidden, 128)
    dout_pad = _round_up(dim_output, 128)

    # Balanced batch tiling: minimal padding waste, and >= min_grid_steps grid
    # steps (v7x megacore) whenever each step can still hold >= 8 real rows.
    n_steps = pl.cdiv(B, block_b)
    if n_steps < min_grid_steps and B >= 8 * min_grid_steps:
        n_steps = min_grid_steps
    tb = _round_up(pl.cdiv(B, n_steps), 8)
    b_pad = _round_up(B, tb)
    grid = (b_pad // tb,)

    # Pad batch rows with zeros (sliced off afterwards).
    x_p = jnp.pad(x, ((0, b_pad - B), (0, 0))) if b_pad != B else x

    # Zero-pad the hidden dimension (exact: zero weights + zero bias -> ReLU(0)=0,
    # zero w2 rows contribute nothing).
    dh = hid_pad - hidden
    w0_p = jnp.pad(w0, ((0, 0), (0, dh)))
    b0_p = jnp.pad(b0, ((0, 0), (0, dh)))
    w1_p = jnp.pad(w1, ((0, dh), (0, dh)))
    b1_p = jnp.pad(b1, ((0, 0), (0, dh)))
    w2_p = jnp.pad(w2, ((0, dh), (0, dout_pad - dim_output)))
    # Fold the padded-logit mask into the bias: -1e30 on padded columns.
    b2_p = jnp.pad(b2, ((0, 0), (0, dout_pad - dim_output)),
                   constant_values=-1e30)

    # bf16 MXU operands (halves resident weight VMEM / doubles MXU rate),
    # f32 accumulation inside the kernel.
    w0_c = w0_p.astype(compute_dtype)
    w1_c = w1_p.astype(compute_dtype)
    w2_c = w2_p.astype(compute_dtype)

    # Resident operands (constant index_map, DMA'd once) -> single-buffered.
    resident = pl.Buffered(1)
    in_specs = [
        pl.BlockSpec((tb, dim_input), lambda i: (i, 0)),              # x: streamed
        pl.BlockSpec((dim_input, hid_pad), lambda i: (0, 0),
                     pipeline_mode=resident),                          # w0
        pl.BlockSpec((1, hid_pad), lambda i: (0, 0),
                     pipeline_mode=resident),                          # b0
        pl.BlockSpec((hid_pad, hid_pad), lambda i: (0, 0),
                     pipeline_mode=resident),                          # w1
        pl.BlockSpec((1, hid_pad), lambda i: (0, 0),
                     pipeline_mode=resident),                          # b1
        pl.BlockSpec((hid_pad, dout_pad), lambda i: (0, 0),
                     pipeline_mode=resident),                          # w2
        pl.BlockSpec((1, dout_pad), lambda i: (0, 0),
                     pipeline_mode=resident),                          # b2
    ]
    out_specs = pl.BlockSpec((tb, dout_pad), lambda i: (i, 0))

    bytes_of = lambda a: a.size * a.dtype.itemsize
    out_itemsize = jnp.dtype(out_dtype).itemsize
    cost = pl.CostEstimate(
        flops=2 * b_pad * (dim_input * hid_pad + hid_pad * hid_pad
                           + hid_pad * dout_pad),
        transcendentals=b_pad * dout_pad,  # exp in the logsumexp
        bytes_accessed=(bytes_of(x_p) + bytes_of(w0_c) + bytes_of(w1_c)
                        + bytes_of(w2_c) + bytes_of(b0_p) + bytes_of(b1_p)
                        + bytes_of(b2_p) + b_pad * dout_pad * out_itemsize),
    )

    # VMEM footprint: double-buffered x/out tiles + single-buffered residents.
    cd_size = jnp.dtype(compute_dtype).itemsize
    vmem_est = (2 * tb * dim_input * 4 + 2 * tb * dout_pad * out_itemsize
                + (dim_input * hid_pad + hid_pad * hid_pad
                   + hid_pad * dout_pad) * cd_size
                + (2 * hid_pad + dout_pad) * 4)
    cp_kwargs = dict(dimension_semantics=("parallel",))
    if vmem_est > 14 * 1024 * 1024:  # above the v5e 16 MiB scoped default
        cp_kwargs["vmem_limit_bytes"] = min(int(vmem_est * 3 // 2),
                                            100 * 1024 * 1024)

    out_padded = pl.pallas_call(
        _mlp_logsoftmax_kernel,
        out_shape=jax.ShapeDtypeStruct((b_pad, dout_pad), out_dtype),
        grid=grid,
        in_specs=in_specs,
        out_specs=out_specs,
        compiler_params=pltpu.CompilerParams(**cp_kwargs),
        cost_estimate=cost,
    )(x_p, w0_c, b0_p, w1_c, b1_p, w2_c, b2_p)

    # TODO(synk): consumers that can take the padded (b_pad, 128) slab directly
    # should skip this slice to avoid an extra HBM pass.
    return out_padded[:B, :dim_output]


def init_params(key, dim_input, n_fc_layers, dim_fc_hidden, dim_output):
    """Deterministic init mirroring PyTorch Linear's U(-1/sqrt(fan_in), 1/sqrt(fan_in)).
    Weights are stored transposed as (in_features, out_features)."""
    assert n_fc_layers == 2, "this script instantiates the module with n_fc_layers=2"
    dims = [(dim_input, dim_fc_hidden),
            (dim_fc_hidden, dim_fc_hidden),
            (dim_fc_hidden, dim_output)]
    params = []
    for (fan_in, fan_out) in dims:
        key, kw, kb = jax.random.split(key, 3)
        bound = 1.0 / jnp.sqrt(jnp.float32(fan_in))
        w = jax.random.uniform(kw, (fan_in, fan_out), jnp.float32, -bound, bound)
        b = jax.random.uniform(kb, (1, fan_out), jnp.float32, -bound, bound)
        params += [w, b]
    return params


def reference_forward_f32(x, w0, b0, w1, b1, w2, b2):
    h = jnp.maximum(x @ w0 + b0, 0.0)
    h = jnp.maximum(h @ w1 + b1, 0.0)
    logits = h @ w2 + b2
    return jax.nn.log_softmax(logits, axis=1)


def reference_forward_matched(x, w0, b0, w1, b1, w2, b2, compute_dtype=jnp.bfloat16):
    """Pure-JAX reference with the same bf16-operand / f32-accumulate recipe."""
    dot = lambda a, b: jnp.dot(a.astype(compute_dtype), b.astype(compute_dtype),
                               preferred_element_type=jnp.float32)
    h = jnp.maximum(dot(x, w0) + b0, 0.0)
    h = jnp.maximum(dot(h, w1) + b1, 0.0)
    logits = dot(h, w2) + b2
    return jax.nn.log_softmax(logits, axis=1)


if __name__ == "__main__":
    # DNN_classifier(dim_input=32, n_fc_layers=2, dim_fc_hidden=64, dim_output=8)
    B, dim_input, n_fc_layers, dim_fc_hidden, dim_output = 8, 32, 2, 64, 8

    key = jax.random.PRNGKey(0)
    key, kx = jax.random.split(key)
    x = jax.random.normal(kx, (B, dim_input), jnp.float32)

    w0, b0, w1, b1, w2, b2 = init_params(key, dim_input, n_fc_layers,
                                         dim_fc_hidden, dim_output)

    out = dnn_classifier_forward(x, w0, b0, w1, b1, w2, b2)
    out = jax.block_until_ready(out)
    assert out.shape == (B, dim_output)

    # Tight check against a precision-matched pure-JAX reference.
    ref_matched = reference_forward_matched(x, w0, b0, w1, b1, w2, b2)
    assert jnp.allclose(out, ref_matched, atol=2e-5, rtol=2e-5), \
        "mismatch vs precision-matched reference"

    # Looser semantic check against the full-f32 PyTorch-equivalent reference
    # (difference is purely the bf16 MXU-operand rounding).
    ref_f32 = reference_forward_f32(x, w0, b0, w1, b1, w2, b2)
    assert jnp.allclose(out, ref_f32, atol=1e-1), "mismatch vs f32 reference"

    # log_softmax rows should exponentiate-sum to ~1
    assert jnp.allclose(jnp.sum(jnp.exp(out), axis=1), 1.0, atol=1e-4)

    # Exercise the multi-step / v7x path (>=2 grid steps, odd batch, padding).
    B2 = 1000
    key, kx2 = jax.random.split(key)
    x2 = jax.random.normal(kx2, (B2, dim_input), jnp.float32)
    out2 = jax.block_until_ready(
        dnn_classifier_forward(x2, w0, b0, w1, b1, w2, b2))
    ref2 = reference_forward_matched(x2, w0, b0, w1, b1, w2, b2)
    assert out2.shape == (B2, dim_output)
    assert jnp.allclose(out2, ref2, atol=2e-5, rtol=2e-5), \
        "mismatch vs precision-matched reference (multi-tile batch)"

    print("KERNEL_OK")
</pallas_src>

<mosaic_0001>
module attributes {stable_mosaic.version = 11 : i64} {
  func.func @_mlp_logsoftmax_kernel(%arg0: i32, %arg1: memref<8x32xf32, #tpu.memory_space<vmem>>, %arg2: memref<32x128xbf16, #tpu.memory_space<vmem>>, %arg3: memref<1x128xf32, #tpu.memory_space<vmem>>, %arg4: memref<128x128xbf16, #tpu.memory_space<vmem>>, %arg5: memref<1x128xf32, #tpu.memory_space<vmem>>, %arg6: memref<128x128xbf16, #tpu.memory_space<vmem>>, %arg7: memref<1x128xf32, #tpu.memory_space<vmem>>, %arg8: memref<8x128xf32, #tpu.memory_space<vmem>>) attributes {dimension_semantics = [#tpu.dimension_semantics<parallel>], iteration_bounds = array<i64: 1>, scalar_prefetch = 0 : i64, scratch_operands = 0 : i64, tpu.core_type = #tpu.core_type<tc>, window_params = [{transform_indices = @transform_0, window_bounds = array<i64: 8, 32>}, {pipeline_mode = #tpu.pipeline_mode<synchronous>, transform_indices = @transform_1, window_bounds = array<i64: 32, 128>}, {pipeline_mode = #tpu.pipeline_mode<synchronous>, transform_indices = @transform_2, window_bounds = array<i64: 1, 128>}, {pipeline_mode = #tpu.pipeline_mode<synchronous>, transform_indices = @transform_3, window_bounds = array<i64: 128, 128>}, {pipeline_mode = #tpu.pipeline_mode<synchronous>, transform_indices = @transform_4, window_bounds = array<i64: 1, 128>}, {pipeline_mode = #tpu.pipeline_mode<synchronous>, transform_indices = @transform_5, window_bounds = array<i64: 128, 128>}, {pipeline_mode = #tpu.pipeline_mode<synchronous>, transform_indices = @transform_6, window_bounds = array<i64: 1, 128>}, {transform_indices = @transform_7, window_bounds = array<i64: 8, 128>}]} {
    %c0 = arith.constant 0 : index
    %c0_0 = arith.constant 0 : index
    %0 = vector.load %arg1[%c0, %c0_0] : memref<8x32xf32, #tpu.memory_space<vmem>>, vector<8x32xf32>
    %1 = arith.truncf %0 : vector<8x32xf32> to vector<8x32xbf16>
    %c0_1 = arith.constant 0 : index
    %c0_2 = arith.constant 0 : index
    %2 = vector.load %arg2[%c0_1, %c0_2] : memref<32x128xbf16, #tpu.memory_space<vmem>>, vector<32x128xbf16>
    %cst = arith.constant dense<0.000000e+00> : vector<8x128xf32>
    %3 = tpu.matmul %1, %2, %cst {dimension_numbers = #tpu.dot_dimension_numbers<[1], [0], [0], [1], [0, 0, 1, 1], [], []>} : vector<8x32xbf16>, vector<32x128xbf16>, vector<8x128xf32> -> vector<8x128xf32>
    %c0_3 = arith.constant 0 : index
    %c0_4 = arith.constant 0 : index
    %4 = vector.load %arg3[%c0_3, %c0_4] : memref<1x128xf32, #tpu.memory_space<vmem>>, vector<1x128xf32>
    %5 = vector.broadcast %4 : vector<1x128xf32> to vector<8x128xf32>
    %6 = arith.addf %3, %5 : vector<8x128xf32>
    %cst_5 = arith.constant 0.000000e+00 : f32
    %7 = vector.broadcast %cst_5 : f32 to vector<8x128xf32>
    %8 = arith.maximumf %6, %7 : vector<8x128xf32>
    %9 = arith.truncf %8 : vector<8x128xf32> to vector<8x128xbf16>
    %c0_6 = arith.constant 0 : index
    %c0_7 = arith.constant 0 : index
    %10 = vector.load %arg4[%c0_6, %c0_7] : memref<128x128xbf16, #tpu.memory_space<vmem>>, vector<128x128xbf16>
    %cst_8 = arith.constant dense<0.000000e+00> : vector<8x128xf32>
    %11 = tpu.matmul %9, %10, %cst_8 {dimension_numbers = #tpu.dot_dimension_numbers<[1], [0], [0], [1], [0, 0, 1, 1], [], []>} : vector<8x128xbf16>, vector<128x128xbf16>, vector<8x128xf32> -> vector<8x128xf32>
    %c0_9 = arith.constant 0 : index
    %c0_10 = arith.constant 0 : index
    %12 = vector.load %arg5[%c0_9, %c0_10] : memref<1x128xf32, #tpu.memory_space<vmem>>, vector<1x128xf32>
    %13 = vector.broadcast %12 : vector<1x128xf32> to vector<8x128xf32>
    %14 = arith.addf %11, %13 : vector<8x128xf32>
    %cst_11 = arith.constant 0.000000e+00 : f32
    %15 = vector.broadcast %cst_11 : f32 to vector<8x128xf32>
    %16 = arith.maximumf %14, %15 : vector<8x128xf32>
    %17 = arith.truncf %16 : vector<8x128xf32> to vector<8x128xbf16>
    %c0_12 = arith.constant 0 : index
    %c0_13 = arith.constant 0 : index
    %18 = vector.load %arg6[%c0_12, %c0_13] : memref<128x128xbf16, #tpu.memory_space<vmem>>, vector<128x128xbf16>
    %cst_14 = arith.constant dense<0.000000e+00> : vector<8x128xf32>
    %19 = tpu.matmul %17, %18, %cst_14 {dimension_numbers = #tpu.dot_dimension_numbers<[1], [0], [0], [1], [0, 0, 1, 1], [], []>} : vector<8x128xbf16>, vector<128x128xbf16>, vector<8x128xf32> -> vector<8x128xf32>
    %c0_15 = arith.constant 0 : index
    %c0_16 = arith.constant 0 : index
    %20 = vector.load %arg7[%c0_15, %c0_16] : memref<1x128xf32, #tpu.memory_space<vmem>>, vector<1x128xf32>
    %21 = vector.broadcast %20 : vector<1x128xf32> to vector<8x128xf32>
    %22 = arith.addf %19, %21 : vector<8x128xf32>
    %cst_17 = arith.constant dense<0xFF800000> : vector<8xf32>
    %23 = vector.multi_reduction <maximumf>, %22, %cst_17 [1] : vector<8x128xf32> to vector<8xf32>
    %24 = vector.shape_cast %23 : vector<8xf32> to vector<8x1xf32>
    %25 = vector.broadcast %24 : vector<8x1xf32> to vector<8x128xf32>
    %26 = arith.subf %22, %25 : vector<8x128xf32>
    %27 = math.exp %26 : vector<8x128xf32>
    %cst_18 = arith.constant dense<0.000000e+00> : vector<8xf32>
    %28 = vector.multi_reduction <add>, %27, %cst_18 [1] : vector<8x128xf32> to vector<8xf32>
    %29 = vector.shape_cast %28 : vector<8xf32> to vector<8x1xf32>
    %30 = math.log %29 : vector<8x1xf32>
    %31 = vector.broadcast %30 : vector<8x1xf32> to vector<8x128xf32>
    %32 = arith.subf %26, %31 : vector<8x128xf32>
    %c0_19 = arith.constant 0 : index
    %c0_20 = arith.constant 0 : index
    %33 = vector.load %arg8[%c0_19, %c0_20] : memref<8x128xf32, #tpu.memory_space<vmem>>, vector<8x128xf32>
    tpu.vector_store %arg8[%c0_19, %c0_20], %32 {strides = array<i32>} : memref<8x128xf32, #tpu.memory_space<vmem>>, vector<8x128xf32>,
    return
  }
  func.func @transform_0(%arg0: i32) -> (i32, i32) {
    %c0_i32 = arith.constant 0 : i32
    %c0_i32_0 = arith.constant 0 : i32
    return %arg0, %c0_i32 : i32, i32
  }
  func.func @transform_1(%arg0: i32) -> (i32, i32) {
    %c0_i32 = arith.constant 0 : i32
    %c0_i32_0 = arith.constant 0 : i32
    %c0_i32_1 = arith.constant 0 : i32
    return %c0_i32, %c0_i32_0 : i32, i32
  }
  func.func @transform_2(%arg0: i32) -> (i32, i32) {
    %c0_i32 = arith.constant 0 : i32
    %c0_i32_0 = arith.constant 0 : i32
    %c0_i32_1 = arith.constant 0 : i32
    return %c0_i32, %c0_i32_0 : i32, i32
  }
  func.func @transform_3(%arg0: i32) -> (i32, i32) {
    %c0_i32 = arith.constant 0 : i32
    %c0_i32_0 = arith.constant 0 : i32
    %c0_i32_1 = arith.constant 0 : i32
    return %c0_i32, %c0_i32_0 : i32, i32
  }
  func.func @transform_4(%arg0: i32) -> (i32, i32) {
    %c0_i32 = arith.constant 0 : i32
    %c0_i32_0 = arith.constant 0 : i32
    %c0_i32_1 = arith.constant 0 : i32
    return %c0_i32, %c0_i32_0 : i32, i32
  }
  func.func @transform_5(%arg0: i32) -> (i32, i32) {
    %c0_i32 = arith.constant 0 : i32
    %c0_i32_0 = arith.constant 0 : i32
    %c0_i32_1 = arith.constant 0 : i32
    return %c0_i32, %c0_i32_0 : i32, i32
  }
  func.func @transform_6(%arg0: i32) -> (i32, i32) {
    %c0_i32 = arith.constant 0 : i32
    %c0_i32_0 = arith.constant 0 : i32
    %c0_i32_1 = arith.constant 0 : i32
    return %c0_i32, %c0_i32_0 : i32, i32
  }
  func.func @transform_7(%arg0: i32) -> (i32, i32) {
    %c0_i32 = arith.constant 0 : i32
    %c0_i32_0 = arith.constant 0 : i32
    return %arg0, %c0_i32 : i32, i32
  }
}

</mosaic_0001>

<bundles_post_ra>
// kernel: dnn_classifier_forward.1
= control target key start
LH: loop header
LB: loop body
LE: loop exit
PB: predicated region body
PF: predicated region fallthrough
CT: control target
= control target key end

     0   :  { %s495_s0 = inlined_call_operand.vmem [shape: f32[8,32], index: 0, kind: input, shape index: {}]   ;;  %s496_s1 = inlined_call_operand.vmem [shape: bf16[32,128], index: 1, kind: input, shape index: {}]   ;;  %s497_s2 = inlined_call_operand.vmem [shape: f32[1,128], index: 2, kind: input, shape index: {}]   ;;  %s498_s3 = inlined_call_operand.vmem [shape: bf16[128,128], index: 3, kind: input, shape index: {}]   ;;  %s499_s4 = inlined_call_operand.vmem [shape: f32[1,128], index: 4, kind: input, shape index: {}]   ;;  %s500_s5 = inlined_call_operand.vmem [shape: bf16[128,128], index: 5, kind: input, shape index: {}]   ;;  %s501_s6 = inlined_call_operand.vmem [shape: f32[1,128], index: 6, kind: input, shape index: {}]   ;;  %s502_s7 = inlined_call_operand.hbm [shape: f32[8,128], index: 7, kind: output, shape index: {}]  }
   0x1   :  { %v334_v0 = vld [vmem:[%s496_s1 + $0x8] sm:$0xff]  ;;  %v342_v1 = vld [vmem:[%s498_s3 + $0x38] sm:$0xff]  ;;  %v333_v2 = vld [vmem:[%s496_s1] sm:$0xff] }
   0x2   :  { %60 = vmatpush.bf16.msra.mxu0 %v334_v0  ;;  %v28_v3 = vld [vmem:[%s495_s0] sm:$0xff]  ;;  %137 = vmatpush.bf16.msra.mxu1 %v342_v1  ;;  %v341_v4 = vld [vmem:[%s498_s3 + $0x30] sm:$0xff] }
   0x3   :  { %12 = vsyncpa [#allocation3], 0  ;;  %v29_v5 = vpack.c.bf16 %v28_v3, %v28_v3  ;;  %vm50_vm0 = vcmask 261120   ;;  %v340_v6 = vld [vmem:[%s498_s3 + $0x28] sm:$0xff]  ;;  %v339_v7 = vld [vmem:[%s498_s3 + $0x20] sm:$0xff]  ;;  %s251_s18 = sshll.u32 %s502_s7, 4  ;;  %s252_s18 = int_to_ptr.hbm [resolvable:$true] %s251_s18 }
   0x4   :  { %v338_v8 = vld [vmem:[%s498_s3 + $0x18] sm:$0xff]  ;;  %v337_v9 = vld [vmem:[%s498_s3 + $0x10] sm:$0xff]  ;;  %v336_v10 = vld [vmem:[%s498_s3 + $0x8] sm:$0xff] }
   0x5   :  { %v335_v11 = vld [vmem:[%s498_s3] sm:$0xff]  ;;  %v350_v12 = vld [vmem:[%s500_s5 + $0x38] sm:$0xff]  ;;  %v349_v13 = vld [vmem:[%s500_s5 + $0x30] sm:$0xff] }
   0x6   :  { %61 = vmatpush.bf16.msra.mxu0 %v333_v2  ;;  %138 = vmatpush.bf16.msra.mxu1 %v341_v4  ;;  %v348_v14 = vld [vmem:[%s500_s5 + $0x28] sm:$0xff]  ;;  %v347_v15 = vld [vmem:[%s500_s5 + $0x20] sm:$0xff]  ;;  %v346_v16 = vld [vmem:[%s500_s5 + $0x18] sm:$0xff] }
   0x7   :  { %220 = vmatpush.bf16.msra.mxu2 %v350_v12  ;;  %v345_v17 = vld [vmem:[%s500_s5 + $0x10] sm:$0xff]  ;;  %v352_v18 = vld [vmem:[%s497_s2] ss:$0 sm:$0xff]  ;;  %v344_v24 = vld [vmem:[%s500_s5 + $0x8] sm:$0xff] }
   0x8   :  { %v343_v25 = vld [vmem:[%s500_s5] sm:$0xff] }
   0x9   :  { %268 = vmatmul.msk.bf16.vlgmr.msra.gmra.mxu0 %vm50_vm0, %v29_v5  ;;  %v353_v26 = vld [vmem:[%s499_s4] ss:$0 sm:$0xff]  ;;  %s385_s4 = smov [#allocation2]  }
   0xa   :  { %139 = vmatpush.bf16.msra.mxu1 %v340_v6  ;;  %v354_v32 = vld [vmem:[%s501_s6] ss:$0 sm:$0xff]  ;;  %s249_s5 = sshll.u32 %s385_s4, 4  ;;  %s250_s5 = int_to_ptr.vmem [resolvable:$true] %s249_s5 }
   0xb   :  { %221 = vmatpush.bf16.msra.mxu2 %v349_v13 }
   0xe   :  { %140 = vmatpush.bf16.msra.mxu1 %v339_v7 }
   0xf   :  { %222 = vmatpush.bf16.msra.mxu2 %v348_v14 }
  0x12   :  { %141 = vmatpush.bf16.msra.mxu1 %v338_v8 }
  0x13   :  { %223 = vmatpush.bf16.msra.mxu2 %v347_v15 }
  0x16   :  { %142 = vmatpush.bf16.msra.mxu1 %v337_v9 }
  0x17   :  { %224 = vmatpush.bf16.msra.mxu2 %v346_v16 }
  0x1a   :  { %143 = vmatpush.bf16.msra.mxu1 %v336_v10 }
  0x1b   :  { %225 = vmatpush.bf16.msra.mxu2 %v345_v17 }
  0x1e   :  { %144 = vmatpush.bf16.msra.mxu1 %v335_v11 }
  0x1f   :  { %226 = vmatpush.bf16.msra.mxu2 %v344_v24 }
  0x23   :  { %227 = vmatpush.bf16.msra.mxu2 %v343_v25 }
  0x86   :  { %v63_v19 = vpop.f32.mrf.mxu0 }
  0x87   :  { %v64_v20 = vadd.f32 %v352_v18, %v63_v19 }
  0x89   :  { %v67_v21 = vmax.f32 %v64_v20, 0.0 }
  0x8b   :  { %v68_v22 = vpack.c.bf16 %v67_v21, %v67_v21 }
  0x8d   :  { %145 = vmatmul.bf16.vlgmr.msra.gmra.mxu1 %v68_v22 }
  0x8e   :  { %v65_v23 = vpop.f32.mrf.mxu0 }
 0x10a   :  { %v146_v27 = vpop.f32.mrf.mxu1 }
 0x10b   :  { %v147_v28 = vadd.f32 %v353_v26, %v146_v27 }
 0x10d   :  { %v150_v29 = vmax.f32 %v147_v28, 0.0 }
 0x10f   :  { %v151_v30 = vpack.c.bf16 %v150_v29, %v150_v29 }
 0x111   :  { %228 = vmatmul.bf16.vlgmr.msra.gmra.mxu2 %v151_v30 }
 0x112   :  { %v148_v31 = vpop.f32.mrf.mxu1 }
 0x194   :  { %v229_v33 = vpop.f32.mrf.mxu2 }
 0x195   :  { %v230_v34 = vadd.f32 %v354_v32, %v229_v33 }
 0x197   :  { %233 = vmax.xlane.f32.xlu0 %v230_v34 }
 0x19c   :  { %v231_v35 = vpop.f32.mrf.mxu2 }
 0x20a   :  { %v234_v36 = vpop.xlane.xlu0 %233 }
 0x20b   :  { %v235_v37 = vsub.f32 %v230_v34, %v234_v36 }
 0x20d   :  { %v236_v38 = vmul.f32 1.442695, %v235_v37 }
 0x20f   :  { %355 = vpow2.f32 %v236_v38 }
 0x215   :  { %v356_v39 = vpop.eup %355 }
 0x216   :  { %238 = vadd.xlane.f32.xlu0 %v356_v39 }
 0x289   :  { %v239_v40 = vpop.xlane.xlu0 %238 }
 0x28a   :  { %357 = vlog2.f32 %v239_v40 }
 0x290   :  { %v358_v41 = vpop.eup %357 }
 0x291   :  { %v241_v42 = vmul.f32 0.6931472, %v358_v41 }
 0x293   :  { %v242_v43 = vsub.f32 %v235_v37, %v241_v42 }
 0x295   :  { %243 = vst [vmem:[#allocation2] sm:$0xff] %v242_v43 }
 0x296   :  { %254 = dma.vmem_to_hbm [thread:$0]  %s250_s5, 128, %s252_s18, [#allocation3]  }
 0x297   :  { %383 = dma.done.wait [#allocation3], 128  }
 0x298   :  { %384 = vsyncadd [#allocation3], 4294967168 }
 0x299   :  { %259 = vsyncpa [#allocation3], 1 }

</bundles_post_ra>
